<compile_context>
chip_gen: v7x
topology: tpu7x:2x2x1
jax: 0.10.0
libtpu: 0.0.40
codegen_flags: <defaults>
</compile_context>

<pallas_src>
import functools

import jax
import jax.numpy as jnp
from jax import lax
from jax.experimental import pallas as pl
from jax.experimental.pallas import tpu as pltpu


NUM_CORES = 2  # v7x has 2 TCs/chip; size-2 parallel axis is a no-op on v5e/v6e.


def _xent_kernel(preds_ref, target_ref, wrow_ref, num_ref, den_ref, *,
                 batch, tile_b, tiles_per_core):
    c = pl.program_id(0)   # parallel (per-TensorCore) axis
    i = pl.program_id(1)   # reduction axis over this core's batch tiles

    @pl.when(i == 0)
    def _init():
        num_ref[...] = jnp.zeros_like(num_ref)
        den_ref[...] = jnp.zeros_like(den_ref)

    x_raw = preds_ref[...]                        # (TB, C) native dtype
    tgt = target_ref[...]                         # (TB, 1) int32
    w_row = wrow_ref[...]                         # (TB, 1) f32, 0 for ignored rows
    tb, nc = x_raw.shape

    # Gather the target logit with a masked lane-reduction on the raw preds
    # (exact: only one non-zero term per row), before the f32 cast.
    col_ids = lax.broadcasted_iota(jnp.int32, (tb, nc), 1)
    hit = col_ids == tgt                                              # (TB, C)
    x_t = jnp.sum(jnp.where(hit, x_raw, jnp.zeros_like(x_raw)),
                  axis=-1, keepdims=True).astype(jnp.float32)         # (TB, 1)

    # Numerically stable log-sum-exp along the class (lane) axis in f32.
    x = x_raw.astype(jnp.float32)
    m = jnp.max(x, axis=-1, keepdims=True)                            # (TB, 1)
    lse = jnp.log(jnp.sum(jnp.exp(x - m), axis=-1, keepdims=True))    # (TB, 1)
    nll = (m + lse) - x_t                                             # (TB, 1)

    # Mask rows beyond the true batch (ragged last tile / padded per-core
    # tiles).  Select, not multiply, so garbage/NaN padding cannot propagate.
    tile_idx = c * tiles_per_core + i
    row_ids = tile_idx * tile_b + lax.broadcasted_iota(jnp.int32, (tb, 1), 0)
    valid = row_ids < batch
    w_eff = jnp.where(valid, w_row, 0.0)
    nll = jnp.where(valid, nll, 0.0)

    # Per-core partial sums, broadcast across the lane-dense (1,128) block.
    num_ref[...] += jnp.sum(w_eff * nll)
    den_ref[...] += jnp.sum(w_eff)


def _choose_batch_tile(batch, num_classes, itemsize):
    """Largest batch tile whose per-core working set fits a conservative VMEM
    budget on every TPU generation (v5e scoped default raised explicitly,
    v7x has 64 MiB physical per TC)."""
    budget = 24 * 1024 * 1024                      # per-core working-set bytes
    per_row = (
        2 * num_classes * itemsize                 # double-buffered preds blocks
        + 2 * num_classes * 4                      # in-kernel f32 cast/exp slabs
        + 2 * 2 * 128 * 4                          # (tb,1) target + w_row blocks,
    )                                              #   lane-padded, double-buffered
    tb = budget // max(1, per_row)
    tb = (tb // 8) * 8                             # multiple of 8 sublanes
    tb = max(8, min(tb, 16384))
    return batch if batch <= tb else tb


def softmax_cross_entropy_loss(preds, target, class_weights=None, *, tile_b=None):
    """preds: [B, C] float logits, target: [B] int class ids. Scalar f32 loss."""
    B, C = preds.shape
    target = target.astype(jnp.int32).reshape(B)

    if class_weights is None:
        w_full = jnp.ones((C,), dtype=jnp.float32)
    else:
        w_full = jnp.asarray(class_weights, dtype=jnp.float32).reshape(C)
    # Hoisted class-weight gather; out-of-range targets get weight 0 so they
    # are ignored (contribute 0 to numerator and denominator).
    in_range = (target >= 0) & (target < C)
    w_row = jnp.where(in_range, w_full[jnp.clip(target, 0, C - 1)], 0.0)
    w_row = w_row.astype(jnp.float32).reshape(B, 1)
    target2d = target.reshape(B, 1)

    itemsize = jnp.dtype(preds.dtype).itemsize
    tb = tile_b if tile_b is not None else _choose_batch_tile(B, C, itemsize)
    num_tiles = pl.cdiv(B, tb)
    tiles_per_core = pl.cdiv(num_tiles, NUM_CORES)

    def tile_index(c, i):
        # Clamp so padded per-core tiles stay in range; the kernel masks their
        # rows out via `row_ids < batch`.
        return jnp.minimum(c * tiles_per_core + i, num_tiles - 1)

    kernel = functools.partial(_xent_kernel, batch=B, tile_b=tb,
                               tiles_per_core=tiles_per_core)
    cost = pl.CostEstimate(
        flops=6 * B * C,
        transcendentals=B * C + B,
        bytes_accessed=B * C * itemsize + 8 * B + 2 * NUM_CORES * 128 * 4,
    )

    num, den = pl.pallas_call(
        kernel,
        out_shape=(jax.ShapeDtypeStruct((1, NUM_CORES * 128), jnp.float32),
                   jax.ShapeDtypeStruct((1, NUM_CORES * 128), jnp.float32)),
        grid=(NUM_CORES, tiles_per_core),
        in_specs=[
            pl.BlockSpec((tb, C), lambda c, i: (tile_index(c, i), 0)),  # preds
            pl.BlockSpec((tb, 1), lambda c, i: (tile_index(c, i), 0)),  # targets
            pl.BlockSpec((tb, 1), lambda c, i: (tile_index(c, i), 0)),  # w_row
        ],
        out_specs=(
            pl.BlockSpec((1, 128), lambda c, i: (0, c)),   # per-core num partial
            pl.BlockSpec((1, 128), lambda c, i: (0, c)),   # per-core den partial
        ),
        compiler_params=pltpu.CompilerParams(
            dimension_semantics=("parallel", "arbitrary"),
            vmem_limit_bytes=48 * 1024 * 1024),
        cost_estimate=cost,
    )(preds, target2d, w_row)

    num_parts = num.reshape(NUM_CORES, 128)[:, 0]
    den_parts = den.reshape(NUM_CORES, 128)[:, 0]
    # Weighted-mean reduction (PyTorch default).  den == 0 (all rows ignored /
    # zero-weighted) -> NaN, matching PyTorch's 0/0 behaviour.
    return jnp.sum(num_parts) / jnp.sum(den_parts)


def _reference_loss(preds, target, class_weights):
    log_sm = jax.nn.log_softmax(preds.astype(jnp.float32), axis=-1)
    picked = -log_sm[jnp.arange(preds.shape[0]), target]
    w_row = class_weights[target]
    return jnp.sum(picked * w_row) / jnp.sum(w_row)


if __name__ == "__main__":
    key = jax.random.PRNGKey(0)
    k1, k2, k3, k4 = jax.random.split(key, 4)

    # Case 1: small [batch, num_classes] shape with class weights (single tile,
    # second parallel-core slice fully masked).
    B, C = 8, 32
    preds = jax.random.normal(k1, (B, C), dtype=jnp.float32)
    target = jax.random.randint(k2, (B,), 0, C, dtype=jnp.int32)
    class_weights = 1.0 + 0.05 * jnp.arange(C, dtype=jnp.float32)

    loss = softmax_cross_entropy_loss(preds, target, class_weights)
    jax.block_until_ready(loss)
    ref = _reference_loss(preds, target, class_weights)
    assert jnp.allclose(loss, ref, rtol=1e-5, atol=1e-5), (loss, ref)

    # Case 2: multi-tile path with a ragged last tile and an odd tile count
    # (exercises the per-core split, the clamped index_map, the resident
    # per-core accumulators and the padded-row masking).
    B2, C2 = 20, 32
    preds2 = jax.random.normal(k3, (B2, C2), dtype=jnp.float32)
    target2 = jax.random.randint(k4, (B2,), 0, C2, dtype=jnp.int32)
    loss2 = softmax_cross_entropy_loss(preds2, target2, None, tile_b=8)
    jax.block_until_ready(loss2)
    ref2 = _reference_loss(preds2, target2, jnp.ones((C2,), dtype=jnp.float32))
    assert jnp.allclose(loss2, ref2, rtol=1e-5, atol=1e-5), (loss2, ref2)

    print("KERNEL_OK")
</pallas_src>

<mosaic_0001>
module attributes {stable_mosaic.version = 11 : i64} {
  func.func @_xent_kernel(%arg0: i32, %arg1: i32, %arg2: memref<8x32xf32, #tpu.memory_space<vmem>>, %arg3: memref<8x1xi32, #tpu.memory_space<vmem>>, %arg4: memref<8x1xf32, #tpu.memory_space<vmem>>, %arg5: memref<1x128xf32, #tpu.memory_space<vmem>>, %arg6: memref<1x128xf32, #tpu.memory_space<vmem>>) attributes {dimension_semantics = [#tpu.dimension_semantics<parallel>, #tpu.dimension_semantics<arbitrary>], iteration_bounds = array<i64: 2, 1>, scalar_prefetch = 0 : i64, scratch_operands = 0 : i64, tpu.core_type = #tpu.core_type<tc>, window_params = [{transform_indices = @transform_0, window_bounds = array<i64: 8, 32>}, {transform_indices = @transform_1, window_bounds = array<i64: 8, 1>}, {transform_indices = @transform_2, window_bounds = array<i64: 8, 1>}, {transform_indices = @transform_3, window_bounds = array<i64: 1, 128>}, {transform_indices = @transform_4, window_bounds = array<i64: 1, 128>}]} {
    %c0_i32 = arith.constant 0 : i32
    %0 = arith.cmpi eq, %arg1, %c0_i32 : i32
    %1 = arith.extui %0 : i1 to i32
    %c0_i32_0 = arith.constant 0 : i32
    %2 = arith.cmpi ne, %1, %c0_i32_0 : i32
    scf.if %2 {
      %cst_22 = arith.constant 0.000000e+00 : f32
      %52 = vector.broadcast %cst_22 : f32 to vector<1x128xf32>
      %c0_23 = arith.constant 0 : index
      %c0_24 = arith.constant 0 : index
      %53 = vector.load %arg5[%c0_23, %c0_24] : memref<1x128xf32, #tpu.memory_space<vmem>>, vector<1x128xf32>
      tpu.vector_store %arg5[%c0_23, %c0_24], %52 {strides = array<i32>} : memref<1x128xf32, #tpu.memory_space<vmem>>, vector<1x128xf32>,
      %cst_25 = arith.constant 0.000000e+00 : f32
      %54 = vector.broadcast %cst_25 : f32 to vector<1x128xf32>
      %c0_26 = arith.constant 0 : index
      %c0_27 = arith.constant 0 : index
      %55 = vector.load %arg6[%c0_26, %c0_27] : memref<1x128xf32, #tpu.memory_space<vmem>>, vector<1x128xf32>
      tpu.vector_store %arg6[%c0_26, %c0_27], %54 {strides = array<i32>} : memref<1x128xf32, #tpu.memory_space<vmem>>, vector<1x128xf32>,
    } else {
    }
    %c0 = arith.constant 0 : index
    %c0_1 = arith.constant 0 : index
    %3 = vector.load %arg2[%c0, %c0_1] : memref<8x32xf32, #tpu.memory_space<vmem>>, vector<8x32xf32>
    %c0_2 = arith.constant 0 : index
    %c0_3 = arith.constant 0 : index
    %4 = vector.load %arg3[%c0_2, %c0_3] : memref<8x1xi32, #tpu.memory_space<vmem>>, vector<8x1xi32>
    %c0_4 = arith.constant 0 : index
    %c0_5 = arith.constant 0 : index
    %5 = vector.load %arg4[%c0_4, %c0_5] : memref<8x1xf32, #tpu.memory_space<vmem>>, vector<8x1xf32>
    %6 = tpu.iota {dimensions = array<i32: 1>} : vector<8x32xi32>
    %7 = vector.broadcast %4 : vector<8x1xi32> to vector<8x32xi32>
    %8 = arith.cmpi eq, %6, %7 : vector<8x32xi32>
    %cst = arith.constant 0.000000e+00 : f32
    %9 = vector.broadcast %cst : f32 to vector<8x32xf32>
    %10 = arith.select %8, %3, %9 : vector<8x32xi1>, vector<8x32xf32>
    %cst_6 = arith.constant dense<0.000000e+00> : vector<8xf32>
    %11 = vector.multi_reduction <add>, %10, %cst_6 [1] : vector<8x32xf32> to vector<8xf32>
    %12 = vector.shape_cast %11 : vector<8xf32> to vector<8x1xf32>
    %cst_7 = arith.constant dense<0xFF800000> : vector<8xf32>
    %13 = vector.multi_reduction <maximumf>, %3, %cst_7 [1] : vector<8x32xf32> to vector<8xf32>
    %14 = vector.shape_cast %13 : vector<8xf32> to vector<8x1xf32>
    %15 = vector.broadcast %14 : vector<8x1xf32> to vector<8x32xf32>
    %16 = arith.subf %3, %15 : vector<8x32xf32>
    %17 = math.exp %16 : vector<8x32xf32>
    %cst_8 = arith.constant dense<0.000000e+00> : vector<8xf32>
    %18 = vector.multi_reduction <add>, %17, %cst_8 [1] : vector<8x32xf32> to vector<8xf32>
    %19 = vector.shape_cast %18 : vector<8xf32> to vector<8x1xf32>
    %20 = math.log %19 : vector<8x1xf32>
    %21 = arith.addf %14, %20 : vector<8x1xf32>
    %22 = arith.subf %21, %12 : vector<8x1xf32>
    %c1_i32 = arith.constant 1 : i32
    %23 = arith.muli %arg0, %c1_i32 : i32
    %24 = arith.addi %23, %arg1 : i32
    %c8_i32 = arith.constant 8 : i32
    %25 = arith.muli %24, %c8_i32 : i32
    %26 = tpu.iota {dimensions = array<i32: 0>} : vector<8x1xi32>
    %27 = vector.broadcast %25 : i32 to vector<8x1xi32>
    %28 = arith.addi %27, %26 : vector<8x1xi32>
    %c8_i32_9 = arith.constant 8 : i32
    %29 = vector.broadcast %c8_i32_9 : i32 to vector<8x1xi32>
    %30 = arith.cmpi slt, %28, %29 : vector<8x1xi32>
    %cst_10 = arith.constant 0.000000e+00 : f32
    %31 = vector.broadcast %cst_10 : f32 to vector<8x1xf32>
    %32 = arith.select %30, %5, %31 : vector<8x1xi1>, vector<8x1xf32>
    %cst_11 = arith.constant 0.000000e+00 : f32
    %33 = vector.broadcast %cst_11 : f32 to vector<8x1xf32>
    %34 = arith.select %30, %22, %33 : vector<8x1xi1>, vector<8x1xf32>
    %c0_12 = arith.constant 0 : index
    %c0_13 = arith.constant 0 : index
    %35 = vector.load %arg5[%c0_12, %c0_13] : memref<1x128xf32, #tpu.memory_space<vmem>>, vector<1x128xf32>
    %36 = arith.mulf %32, %34 : vector<8x1xf32>
    %37 = vector.shape_cast %36 : vector<8x1xf32> to vector<1x8x1xf32>
    %cst_14 = arith.constant dense<0.000000e+00> : vector<1xf32>
    %38 = vector.multi_reduction <add>, %37, %cst_14 [1, 2] : vector<1x8x1xf32> to vector<1xf32>
    %39 = vector.shape_cast %38 : vector<1xf32> to vector<1x1x1xf32>
    %40 = vector.extract %39[0, 0, 0] : f32 from vector<1x1x1xf32>
    %41 = vector.broadcast %40 : f32 to vector<1x128xf32>
    %42 = arith.addf %35, %41 : vector<1x128xf32>
    %c0_15 = arith.constant 0 : index
    %c0_16 = arith.constant 0 : index
    %43 = vector.load %arg5[%c0_15, %c0_16] : memref<1x128xf32, #tpu.memory_space<vmem>>, vector<1x128xf32>
    tpu.vector_store %arg5[%c0_15, %c0_16], %42 {strides = array<i32>} : memref<1x128xf32, #tpu.memory_space<vmem>>, vector<1x128xf32>,
    %c0_17 = arith.constant 0 : index
    %c0_18 = arith.constant 0 : index
    %44 = vector.load %arg6[%c0_17, %c0_18] : memref<1x128xf32, #tpu.memory_space<vmem>>, vector<1x128xf32>
    %45 = vector.shape_cast %32 : vector<8x1xf32> to vector<1x8x1xf32>
    %cst_19 = arith.constant dense<0.000000e+00> : vector<1xf32>
    %46 = vector.multi_reduction <add>, %45, %cst_19 [1, 2] : vector<1x8x1xf32> to vector<1xf32>
    %47 = vector.shape_cast %46 : vector<1xf32> to vector<1x1x1xf32>
    %48 = vector.extract %47[0, 0, 0] : f32 from vector<1x1x1xf32>
    %49 = vector.broadcast %48 : f32 to vector<1x128xf32>
    %50 = arith.addf %44, %49 : vector<1x128xf32>
    %c0_20 = arith.constant 0 : index
    %c0_21 = arith.constant 0 : index
    %51 = vector.load %arg6[%c0_20, %c0_21] : memref<1x128xf32, #tpu.memory_space<vmem>>, vector<1x128xf32>
    tpu.vector_store %arg6[%c0_20, %c0_21], %50 {strides = array<i32>} : memref<1x128xf32, #tpu.memory_space<vmem>>, vector<1x128xf32>,
    return
  }
  func.func @transform_0(%arg0: i32, %arg1: i32) -> (i32, i32) {
    %c1_i32 = arith.constant 1 : i32
    %0 = arith.muli %arg0, %c1_i32 : i32
    %1 = arith.addi %0, %arg1 : i32
    %c0_i32 = arith.constant 0 : i32
    %2 = arith.minsi %1, %c0_i32 : i32
    %c0_i32_0 = arith.constant 0 : i32
    %c0_i32_1 = arith.constant 0 : i32
    return %2, %c0_i32_0 : i32, i32
  }
  func.func @transform_1(%arg0: i32, %arg1: i32) -> (i32, i32) {
    %c1_i32 = arith.constant 1 : i32
    %0 = arith.muli %arg0, %c1_i32 : i32
    %1 = arith.addi %0, %arg1 : i32
    %c0_i32 = arith.constant 0 : i32
    %2 = arith.minsi %1, %c0_i32 : i32
    %c0_i32_0 = arith.constant 0 : i32
    %c0_i32_1 = arith.constant 0 : i32
    return %2, %c0_i32_0 : i32, i32
  }
  func.func @transform_2(%arg0: i32, %arg1: i32) -> (i32, i32) {
    %c1_i32 = arith.constant 1 : i32
    %0 = arith.muli %arg0, %c1_i32 : i32
    %1 = arith.addi %0, %arg1 : i32
    %c0_i32 = arith.constant 0 : i32
    %2 = arith.minsi %1, %c0_i32 : i32
    %c0_i32_0 = arith.constant 0 : i32
    %c0_i32_1 = arith.constant 0 : i32
    return %2, %c0_i32_0 : i32, i32
  }
  func.func @transform_3(%arg0: i32, %arg1: i32) -> (i32, i32) {
    %c0_i32 = arith.constant 0 : i32
    %c0_i32_0 = arith.constant 0 : i32
    return %c0_i32, %arg0 : i32, i32
  }
  func.func @transform_4(%arg0: i32, %arg1: i32) -> (i32, i32) {
    %c0_i32 = arith.constant 0 : i32
    %c0_i32_0 = arith.constant 0 : i32
    return %c0_i32, %arg0 : i32, i32
  }
}

</mosaic_0001>

<bundles_post_ra>
// kernel: tpu_custom_call.1
= control target key start
LH: loop header
LB: loop body
LE: loop exit
PB: predicated region body
PF: predicated region fallthrough
CT: control target
= control target key end

     0   :  { %10 = vsyncpa [#allocation3], 0  ;;  %s944_s0 = inlined_call_operand.vmem [shape: f32[8,32], index: 0, kind: input, shape index: {}]   ;;  %s945_s1 = inlined_call_operand.vmem [shape: s32[8,1], index: 1, kind: input, shape index: {}]   ;;  %s946_s2 = inlined_call_operand.vmem [shape: f32[8,1], index: 2, kind: input, shape index: {}]   ;;  %s947_s3 = inlined_call_operand.hbm [shape: f32[1,256], index: 3, kind: output, shape index: {0}]   ;;  %s948_s4 = inlined_call_operand.hbm [shape: f32[1,256], index: 4, kind: output, shape index: {1}]  }
   0x1   :  { %12 = vsyncpa [#allocation3 + $0x1], 0 }
   0x2   :  { %13 = vsyncpa [#allocation5], 0 }
   0x3   :  { %15 = vsyncpa [#allocation5 + $0x1], 0  ;;  %s762_s15 = smov 0   ;;  %s764_s16 = smov 0  }
   0x4   :  { %s766_s17 = smov 0   ;;  %s768_s18 = smov 0  }
   0x5   :  { %s770_s19 = smov 0   ;;  %s772_s20 = smov 0  }
   0x6 LB: > { %s528_s21 = sadd.s32 4294967295, %s731_s20   ;;  %s529_s22 = sadd.s32 4294967294, %s731_s20   ;;  %s731_s20 = sphi %s772_s20, %s21_s20   ;;  %s727_s19 = sphi %s770_s19, %s955_s19   ;;  %s723_s18 = sphi %s768_s18, %s954_s18   ;;  %s719_s17 = sphi %s766_s17, %s953_s17   ;;  %s715_s16 = sphi %s764_s16, %s952_s16   ;;  %s711_s15 = sphi %s762_s15, %s951_s15  }
   0x7   : > { %s33_s23 = sadd.s32 1, %s727_s19  ;;  %s136_s24 = sadd.s32 1, %s719_s17 }
   0x8   : > { %p35_p0 = scmp.ge.s32.totalorder %s33_s23, 2  ;;  %p146_p1 = scmp.ne.s32.totalorder %s719_s17, %s715_s16 }
   0x9   : > { %p147_p2 = scmp.eq.s32.totalorder %s528_s21, 1  ;;  %p152_p3 = scmp.ne.s32.totalorder %s715_s16, %s711_s15 }
   0xa   : > { %s957_s23 = smov (%p35_p0, %s33_s23), 0  ;;  %p153_p5 = scmp.eq.s32.totalorder %s529_s22, 1 }
   0xb   : > { %p802_p4 = por %p147_p2, %p146_p1  ;;  %s133_s26 = ssub.s32 %s727_s19, %s957_s23 }
   0xc   : > { %p532_p6 = scmp.ge.s32.totalorder %s731_s20, 1  ;;  %p134_p7 = scmp.eq.s32.totalorder %s133_s26, 0 }
   0xd   : > { %p809_p8 = por %p153_p5, %p152_p3  ;;  %p236_p9 = scmp.lt.s32.totalorder %s731_s20, 3 }
   0xe   : > { %s815_s28 = scalar_select %p134_p7, %s719_s17, %s136_s24  }
   0xf   : > { %p237_p10 = pnand %p532_p6, %p236_p9 }
  0x10   : > { %p282_p11 = scmp.lt.s32.totalorder (!%p237_p10), %s723_s18, 0  ;;  %v733_v0 = vmov (!%p237_p10), 0   ;;  %vm327_vm0 = vcmask (!%p237_p10), 261120   ;;  %v320_v7 = vlaneseq (!%p237_p10)  ;;  %s545_s11 = sshll.u32 (!%p237_p10), %s723_s18, 3  ;;  %vm355_vm3 = vcmask (!%p237_p10), 7168  }
  0x11   : > { %240 = sbr.rel (%p237_p10) target bundleno = 597 (0x255), region = 32  ;;  %616 = vset.pattern.permute.xlu0 (!%p237_p10), %v733_v0  ;;  %v348_v16 = vstv (!%p237_p10), %s545_s11  ;;  %s838_s21 = sand.u32 (!%p237_p10), 1, %s715_s16   ;;  %v734_v29 = vmov (!%p237_p10), 0.0  }
  0x12   : > { %v321_v8 = vand.u32 (!%p237_p10), 127, %v320_v7  ;;  %v347_v15 = vshrl.u32 (!%p237_p10), %v320_v7, 7  ;;  %s841_s22 = scalar_lea.vmem (!%p237_p10), [#allocation2], %s838_s21  ;;  %s845_s24 = scalar_lea.vmem (!%p237_p10), [#allocation4], %s838_s21 }
  0x13   : > { %315 = vst [vmem:[%s841_s22] sm:$0x1] (!%p237_p10), %v734_v29  ;;  %316 = vst [vmem:[%s845_s24] sm:$0x1] (!%p237_p10), %v734_v29  ;;  %s546_s26 = sshll.u32 (!%p237_p10), %s723_s18, 4  ;;  %s413_s8 = sshll.u32 (!%p237_p10), %s845_s24, 4  ;;  %s897_s8 = int_to_ptr.vmem [resolvable:$true] %s413_s8 }
  0x14   : > { %v349_v17 = vadd.s32 (!%p237_p10), %v348_v16, %v347_v15  ;;  %s735_s12 = smov (!%p237_p10), [#allocation2]  }
  0x15   : > { %s625_s13 = sshll.u32 (!%p237_p10), %s735_s12, 4  ;;  %s626_s13 = int_to_ptr.vmem [resolvable:$false] %s625_s13 }
  0x16   : > { %vm350_vm2 = vcmp.lt.s32.totalorder (!%p237_p10), %v349_v17, 8 }
  0x18   : > { %s283_s29 = scalar_select %p282_p11, %s723_s18, 0 }
  0x1a   : > { %s959_s29 = smov (!%p282_p11, %s283_s29), 0  ;;  %v353_v44 = vld [vmem:[%s841_s22] sm:$0x1] }
  0x1b   : > { %s819_s30 = sshll.u32 %s959_s29, 3  ;;  %s400_s29 = sshll.u32 %s841_s22, 4  ;;  %v369_v47 = vld [vmem:[%s845_s24] sm:$0x1]  ;;  %s858_s29 = int_to_ptr.vmem [resolvable:$true] %s400_s29 }
  0x1c   : > { %s287_s7 = scalar_lea.vmem %s944_s0, %s819_s30  ;;  %s297_s10 = scalar_lea.vmem %s945_s1, %s819_s30 }
  0x1d   : > { %v317_v1 = vld [vmem:[%s287_s7] sm:$0xff]  ;;  %s307_s14 = scalar_lea.vmem %s946_s2, %s819_s30  ;;  %s856_s7 = scalar_lea.hbm %s947_s3, %s546_s26 }
  0x1e   : > { %v331_v2 = vsel %vm327_vm0, %v317_v1, -inf  ;;  %v318_v3 = vld [vmem:[%s297_s10] sm:$0xff]  ;;  %s384_s10 = scalar_lea.sflag [#allocation3], %s838_s21  ;;  %s621_s11 = scalar_lea.vmem %s858_s29, 16 }
  0x1f   : > { %332 = vmax.xlane.f32.xlu0 %v331_v2  ;;  %v319_v21 = vld [vmem:[%s307_s14] sm:$0xff]  ;;  %p622_p12 = scmp.ne.s32.totalorder %s858_s29, %s621_s11  ;;  %s627_s14 = scalar_lea.vmem %s626_s13, 32 }
  0x20   : > { %v351_v24 = vsel %vm350_vm2, %v319_v21, 0.0  ;;  %p628_p1 = scmp.lt.s32.totalorder %s858_s29, %s626_s13  ;;  %p629_p2 = scmp.lt.s32.totalorder %s627_s14, %s621_s11 }
  0x21   : > { %v370_v28 = vsel %vm355_vm3, %v351_v24, 0.0  ;;  %p623_p13 = pnand %p622_p12, %p802_p4 }
  0x22   : > { %p630_p3 = por %p629_p2, %p628_p1 }
  0x23   : > { %p624_p0 = pneg %p623_p13 }
  0x25   : > { %p631_p5 = pnand %p630_p3, %p624_p0 }
  0x35   : > { %323 = vperm.xlu0 %616, %v318_v3  }
  0xac   : > { %v333_v4 = vpop.xlane.xlu0 %332 }
  0xad   : > { %v334_v5 = vsub.f32 %v317_v1, %v333_v4 }
  0xaf   : > { %v335_v6 = vmul.f32 1.442695, %v334_v5 }
  0xb1   : > { %617 = vpow2.f32 %v335_v6 }
  0xb4   : > { %v324_v9 = vpop.permute.xlu0 %323 }
  0xb5   : > { %vm325_vm1 = vcmp.eq.s32.totalorder %v321_v8, %v324_v9 }
  0xb6   : > { %v326_v11 = vsel %vm325_vm1, %v317_v1, 0.0 }
  0xb7   : > { %v328_v13 = vsel %vm327_vm0, %v326_v11, 0.0 }
  0xbb   : > { %v618_v10 = vpop.eup %617 }
  0xbc   : > { %v337_v12 = vsel %vm327_vm0, %v618_v10, 0.0 }
  0xbd   : > { %338 = vadd.xlane.f32.xlu1 %v337_v12 }
  0xc1   : > { %329 = vadd.xlane.f32.xlu1 %v328_v13 }
 0x14a   : > { %v339_v14 = vpop.xlane.xlu1 %338 }
 0x14b   : > { %619 = vlog2.f32 %v339_v14 }
 0x14e   : > { %v330_v20 = vpop.xlane.xlu1 %329 }
 0x155   : > { %v620_v18 = vpop.eup %619 }
 0x156   : > { %v341_v19 = vmul.f32 0.6931472, %v620_v18 }
 0x158   : > { %v342_v22 = vadd.f32 %v341_v19, %v333_v4 }
 0x15a   : > { %v343_v23 = vsub.f32 %v342_v22, %v330_v20 }
 0x15c   : > { %v352_v25 = vsel %vm350_vm2, %v343_v23, 0.0 }
 0x15d   : > { %v354_v26 = vmul.f32 %v352_v25, %v351_v24 }
 0x15f   : > { %v356_v27 = vsel %vm355_vm3, %v354_v26, 0.0 }
 0x160   : > { %357 = vadd.xlane.f32.xlu1 %v356_v27 }
 0x164   : > { %371 = vadd.xlane.f32.xlu1 %v370_v28 }
 0x1ed   : > { %v358_v30 = vpop.xlane.xlu1 %357 }
 0x1ee   : > { %v359_v31 = vrot.slane %v358_v30, 4 }
 0x1f0   : > { %v360_v32 = vadd.f32 %v359_v31, %v358_v30 }
 0x1f1   : > { %v372_v33 = vpop.xlane.xlu1 %371 }
 0x1f2   : > { %v361_v34 = vrot.slane %v360_v32, 2  ;;  %v373_v35 = vrot.slane %v372_v33, 4 }
 0x1f4   : > { %v374_v36 = vadd.f32 %v373_v35, %v372_v33  ;;  %v362_v37 = vadd.f32 %v361_v34, %v360_v32 }
 0x1f6   : > { %v375_v38 = vrot.slane %v374_v36, 2  ;;  %v363_v39 = vrot.slane %v362_v37, 1 }
 0x1f8   : > { %v376_v40 = vadd.f32 %v375_v38, %v374_v36  ;;  %v364_v41 = vadd.f32 %v363_v39, %v362_v37 }
 0x1fa   : > { %550 = vpush %v364_v41  ;;  %v377_v42 = vrot.slane %v376_v40, 1 }
 0x1fc   : > { %v378_v43 = vadd.f32 %v377_v42, %v376_v40 }
 0x1fe   : > { %552 = vpush %v378_v43 }
 0x22b   : > { %s551_s30 = spop %550 }
 0x22c   : > { %v366_v45 = vstv %s551_s30 }
 0x22d   : > { %v367_v46 = vadd.f32 %v366_v45, %v353_v44 }
 0x22f   : > { %368 = vst [vmem:[%s841_s22] sm:$0x1] %v367_v46  ;;  %s863_s9 = spop %552 }
 0x230   : > { %v380_v48 = vstv %s863_s9 }
 0x231   : > { %634 = shalt.err (!%p631_p5)
}
 0x232   : > { %s635_s22 = scalar_lea.hbm %s856_s7, 16  ;;  %s639_s6 = scalar_lea.hbm %s947_s3, 32 }
 0x233   : > { %p636_p6 = scmp.ne.s32.totalorder %s856_s7, %s635_s22  ;;  %p640_p10 = scmp.lt.u32.totalorder %s856_s7, %s947_s3 }
 0x234   : > { %p641_p11 = scmp.lt.u32.totalorder %s639_s6, %s635_s22  ;;  %p643_p13 = scmp.lt.u32.totalorder %s635_s22, %s856_s7 }
 0x235   : > { %p637_p7 = pnand %p636_p6, %p802_p4 }
 0x236   : > { %p642_p12 = por %p641_p11, %p640_p10 }
 0x237   : > { %p638_p9 = pneg %p637_p7 }
 0x238   : > { %p644_p0 = por %p643_p13, %p642_p12 }
 0x23a   : > { %p645_p1 = pnand %p644_p0, %p638_p9 }
 0x23c   : > { %648 = shalt.err (!%p645_p1)
}
 0x23d   : > { %554 = dma.vmem_to_hbm [thread:$0]  (%p802_p4), %s858_s29, 16, %s856_s7, %s384_s10   ;;  %v381_v49 = vadd.f32 %v380_v48, %v369_v47 }
 0x23e   : > { %s893_s14 = scalar_lea.hbm %s948_s4, %s546_s26  ;;  %s388_s22 = scalar_lea.sflag [#allocation5], %s838_s21 }
 0x23f   : > { %382 = vst [vmem:[%s845_s24] sm:$0x1] %v381_v49  ;;  %s649_s30 = scalar_lea.vmem %s897_s8, 16  ;;  %s736_s29 = smov [#allocation4]  }
 0x240   : > { %p650_p2 = scmp.ne.s32.totalorder %s897_s8, %s649_s30  ;;  %s653_s18 = sshll.u32 %s736_s29, 4  ;;  %s654_s18 = int_to_ptr.vmem [resolvable:$false] %s653_s18 }
 0x241   : > { %s655_s7 = scalar_lea.vmem %s654_s18, 32  ;;  %p656_p6 = scmp.lt.s32.totalorder %s897_s8, %s654_s18 }
 0x242   : > { %p651_p3 = pnand %p650_p2, %p802_p4  ;;  %p657_p7 = scmp.lt.s32.totalorder %s655_s7, %s649_s30 }
 0x244   : > { %p652_p5 = pneg %p651_p3  ;;  %p658_p9 = por %p657_p7, %p656_p6 }
 0x246   : > { %p659_p10 = pnand %p658_p9, %p652_p5 }
 0x248   : > { %662 = shalt.err (!%p659_p10)
}
 0x249   : > { %s663_s21 = scalar_lea.hbm %s893_s14, 16  ;;  %s667_s10 = scalar_lea.hbm %s948_s4, 32 }
 0x24a   : > { %p664_p11 = scmp.ne.s32.totalorder %s893_s14, %s663_s21  ;;  %p668_p0 = scmp.lt.u32.totalorder %s893_s14, %s948_s4 }
 0x24b   : > { %p669_p1 = scmp.lt.u32.totalorder %s667_s10, %s663_s21  ;;  %p671_p3 = scmp.lt.u32.totalorder %s663_s21, %s893_s14 }
 0x24c   : > { %p665_p12 = pnand %p664_p11, %p802_p4 }
 0x24d   : > { %p670_p2 = por %p669_p1, %p668_p0 }
 0x24e   : > { %p666_p13 = pneg %p665_p12 }
 0x24f   : > { %p672_p5 = por %p671_p3, %p670_p2 }
 0x251   : > { %p673_p6 = pnand %p672_p5, %p666_p13 }
 0x253   : > { %676 = shalt.err (!%p673_p6)
}
 0x254   : > { %555 = dma.vmem_to_hbm [thread:$0]  (%p802_p4), %s897_s8, 16, %s893_s14, %s388_s22  }
 0x255 PF: > { %p565_p7 = scmp.ge.s32.totalorder %s731_s20, 2  ;;  %s425_s9 = sand.u32 1, %s711_s15  }
 0x256   : > { %s426_s12 = scalar_lea.sflag [#allocation3], %s425_s9 }
 0x257   : > { %p559_p9 = pnand %p565_p7, %p809_p8 }
 0x259   : > { %702 = dma.done.wait (!%p559_p9), %s426_s12, 16  }
 0x25a   : > { %704 = vsyncadd (!%p559_p9), %s426_s12, 4294967280  ;;  %s434_s11 = scalar_lea.sflag [#allocation5], %s425_s9 }
 0x25b   : > { %706 = dma.done.wait (!%p559_p9), %s434_s11, 16  }
 0x25c   : > { %708 = vsyncadd (!%p559_p9), %s434_s11, 4294967280  ;;  %s21_s20 = sadd.s32 1, %s731_s20   ;;  %s951_s15 = smov %s715_s16 }
 0x25d   : > { %p18_p10 = scmp.ge.s32.totalorder %s21_s20, 4   ;;  %s952_s16 = smov %s719_s17 }
 0x25e   : > { %s953_s17 = smov %s815_s28  ;;  %s954_s18 = smov %s727_s19 }
 0x25f   : > { %s955_s19 = smov %s957_s23  ;;  %20 = sbr.rel (!%p18_p10) target bundleno = 6 (0x6), region = 94 }
 0x266   :  { %438 = vsyncpa [#allocation3], 1 }
 0x267   :  { %440 = vsyncpa [#allocation3 + $0x1], 1 }
 0x268   :  { %441 = vsyncpa [#allocation5], 1 }
 0x269   :  { %443 = vsyncpa [#allocation5 + $0x1], 1 }

</bundles_post_ra>
